<compile_context>
chip_gen: v7x
topology: tpu7x:2x2x1
jax: 0.10.0
libtpu: 0.0.40
codegen_flags: <defaults>
</compile_context>

<pallas_src>
import functools

import jax
import jax.numpy as jnp
import numpy as np
from jax.experimental import pallas as pl
from jax.experimental.pallas import tpu as pltpu

EPS = 1e-5  # nn.BatchNorm2d default eps


def conv_bn_add_kernel(nrows, cout, p_ref, w_ref, prm_ref, out_ref):
    # Single fused matmul: rows 0..nrows-1 are x1 patches, row `nrows` is the
    # x2 patch.  (R+1, K) @ (K, C_out), f32 accumulate on the MXU.
    y = jnp.dot(p_ref[...], w_ref[...], preferred_element_type=jnp.float32)

    bias = prm_ref[0:1, :]     # (1, C_out)
    gamma = prm_ref[1:2, :]    # (1, C_out)
    beta = prm_ref[2:3, :]     # (1, C_out)

    y1 = y[:nrows, :]                          # conv(x1) rows, bias omitted
    y2 = y[nrows:nrows + 1, :] + bias          # conv(x2) row  (1, C_out)

    # BatchNorm2d, training mode: per-channel batch mean / biased variance.
    # (bias on y1 would cancel under mean subtraction, so it is never added.)
    mean = jnp.mean(y1, axis=0, keepdims=True)
    var = jnp.mean((y1 - mean) ** 2, axis=0, keepdims=True)

    # Fold BN affine + y2 into one scale/shift -> 1 mul + 1 add per element.
    scale = gamma * jax.lax.rsqrt(var + EPS)   # (1, C_out)
    shift = beta - mean * scale + y2           # (1, C_out)
    s = y1 * scale + shift                     # (R, C_out)

    # torch.add(y2, cat(4*[y],1)): each channel group equals y + y2.
    # Slab stores instead of a lane concatenate.
    for g in range(4):
        out_ref[:, g * cout:(g + 1) * cout] = s


def im2col(x, kh, kw):
    # TODO(synk): at real sizes fuse im2col into the kernel (shift-and-matmul)
    # instead of materializing the kh*kw-expanded patches matrix in HBM.
    n, c, h, w = x.shape
    oh, ow = h - kh + 1, w - kw + 1
    cols = []
    for i in range(kh):
        for j in range(kw):
            cols.append(x[:, :, i:i + oh, j:j + ow])
    p = jnp.stack(cols, axis=2)                    # (N, C, KH*KW, OH, OW)
    p = jnp.transpose(p, (0, 3, 4, 1, 2))          # (N, OH, OW, C, KH*KW)
    return p.reshape(n * oh * ow, c * kh * kw), (n, oh, ow)


def model_forward(x1, x2, conv_w, conv_b, bn_gamma, bn_beta):
    cout, cin, kh, kw = conv_w.shape
    p1, (n1, oh1, ow1) = im2col(x1, kh, kw)        # (N*OH*OW, C*KH*KW)
    p2, _ = im2col(x2, kh, kw)                     # (1, C*KH*KW)
    nrows = p1.shape[0]

    patches = jnp.concatenate([p1, p2], axis=0)    # (R+1, K) -> one MXU pass
    wmat = conv_w.reshape(cout, cin * kh * kw).T   # (K, C_out)
    params = jnp.stack([conv_b, bn_gamma, bn_beta], axis=0)  # (3, C_out)

    vmem = pl.BlockSpec(memory_space=pltpu.MemorySpace.VMEM)
    out = pl.pallas_call(
        functools.partial(conv_bn_add_kernel, nrows, cout),
        out_shape=jax.ShapeDtypeStruct((nrows, 4 * cout), jnp.float32),
        in_specs=[vmem, vmem, vmem],
        out_specs=vmem,
    )(patches, wmat, params)

    # Rows are (N, OH, OW); lanes are the 4 replicated channel groups -> NCHW.
    # TODO(synk): keep NHWC end-to-end at real sizes to drop this transpose.
    out = out.reshape(n1, oh1, ow1, 4 * cout).transpose(0, 3, 1, 2)
    return out                                     # (N, 4*C_out, OH, OW)


def reference(x1, x2, conv_w, conv_b, gamma, beta):
    dn = jax.lax.conv_dimension_numbers(x1.shape, conv_w.shape,
                                        ('NCHW', 'OIHW', 'NCHW'))
    bias = conv_b.reshape(1, -1, 1, 1)
    y1 = jax.lax.conv_general_dilated(x1, conv_w, (1, 1), 'VALID',
                                      dimension_numbers=dn) + bias
    y2 = jax.lax.conv_general_dilated(x2, conv_w, (1, 1), 'VALID',
                                      dimension_numbers=dn) + bias
    mean = y1.mean(axis=(0, 2, 3), keepdims=True)
    var = ((y1 - mean) ** 2).mean(axis=(0, 2, 3), keepdims=True)
    y = (y1 - mean) / jnp.sqrt(var + EPS) * gamma.reshape(1, -1, 1, 1) \
        + beta.reshape(1, -1, 1, 1)
    out = jnp.concatenate(4 * [y], axis=1)
    return out + jnp.tile(y2, (1, 4, 1, 1))


if __name__ == "__main__":
    # TODO(synk): the original torch forward is ill-posed as written
    # (conv2d(k=3) on a 1x1 x2 input, and a 3-vs-12 channel broadcast in the
    # add); we use x2 with 3x3 spatial so conv(x2) is 1x1, and broadcast y2
    # over the 4 concatenated channel groups (the natural intent).
    key = jax.random.PRNGKey(0)
    k1, k2, k3, k4, k5, k6 = jax.random.split(key, 6)
    x1 = jax.random.normal(k1, (1, 3, 4, 4), jnp.float32)
    x2 = jax.random.normal(k2, (1, 3, 3, 3), jnp.float32)
    conv_w = 0.2 * jax.random.normal(k3, (3, 3, 3, 3), jnp.float32)  # OIHW
    conv_b = 0.1 * jax.random.normal(k4, (3,), jnp.float32)
    bn_gamma = 1.0 + 0.1 * jax.random.normal(k5, (3,), jnp.float32)
    bn_beta = 0.1 * jax.random.normal(k6, (3,), jnp.float32)

    out = model_forward(x1, x2, conv_w, conv_b, bn_gamma, bn_beta)
    out = jax.block_until_ready(out)

    ref = reference(x1, x2, conv_w, conv_b, bn_gamma, bn_beta)
    assert out.shape == (1, 12, 2, 2), out.shape
    np.testing.assert_allclose(np.asarray(out), np.asarray(ref),
                               rtol=1e-4, atol=1e-4)
    print("KERNEL_OK")
</pallas_src>

<mosaic_0001>
module attributes {stable_mosaic.version = 11 : i64} {
  func.func @conv_bn_add_kernel(%arg0: memref<5x27xf32, #tpu.memory_space<vmem>>, %arg1: memref<27x3xf32, #tpu.memory_space<vmem>>, %arg2: memref<3x3xf32, #tpu.memory_space<vmem>>, %arg3: memref<4x12xf32, #tpu.memory_space<vmem>>) attributes {dimension_semantics = [], scalar_prefetch = 0 : i64, scratch_operands = 0 : i64, tpu.core_type = #tpu.core_type<tc>} {
    %c0 = arith.constant 0 : index
    %c0_0 = arith.constant 0 : index
    %0 = vector.load %arg0[%c0, %c0_0] : memref<5x27xf32, #tpu.memory_space<vmem>>, vector<5x27xf32>
    %c0_1 = arith.constant 0 : index
    %c0_2 = arith.constant 0 : index
    %1 = vector.load %arg1[%c0_1, %c0_2] : memref<27x3xf32, #tpu.memory_space<vmem>>, vector<27x3xf32>
    %cst = arith.constant dense<0.000000e+00> : vector<5x3xf32>
    %2 = tpu.matmul %0, %1, %cst {dimension_numbers = #tpu.dot_dimension_numbers<[1], [0], [0], [1], [0, 0, 1, 1], [], []>} : vector<5x27xf32>, vector<27x3xf32>, vector<5x3xf32> -> vector<5x3xf32>
    %c0_3 = arith.constant 0 : index
    %c0_4 = arith.constant 0 : index
    %3 = vector.load %arg2[%c0_3, %c0_4] : memref<3x3xf32, #tpu.memory_space<vmem>>, vector<1x3xf32>
    %c1 = arith.constant 1 : index
    %c0_5 = arith.constant 0 : index
    %4 = vector.load %arg2[%c1, %c0_5] : memref<3x3xf32, #tpu.memory_space<vmem>>, vector<1x3xf32>
    %c2 = arith.constant 2 : index
    %c0_6 = arith.constant 0 : index
    %5 = vector.load %arg2[%c2, %c0_6] : memref<3x3xf32, #tpu.memory_space<vmem>>, vector<1x3xf32>
    %6 = vector.extract_strided_slice %2 {offsets = [0, 0], sizes = [4, 3], strides = [1, 1]} : vector<5x3xf32> to vector<4x3xf32>
    %7 = vector.extract_strided_slice %2 {offsets = [4, 0], sizes = [1, 3], strides = [1, 1]} : vector<5x3xf32> to vector<1x3xf32>
    %8 = arith.addf %7, %3 : vector<1x3xf32>
    %cst_7 = arith.constant dense<0.000000e+00> : vector<3xf32>
    %9 = vector.multi_reduction <add>, %6, %cst_7 [0] : vector<4x3xf32> to vector<3xf32>
    %10 = vector.shape_cast %9 : vector<3xf32> to vector<1x3xf32>
    %cst_8 = arith.constant 4.000000e+00 : f32
    %11 = vector.broadcast %cst_8 : f32 to vector<1x3xf32>
    %12 = arith.divf %10, %11 : vector<1x3xf32>
    %13 = vector.broadcast %12 : vector<1x3xf32> to vector<4x3xf32>
    %14 = arith.subf %6, %13 : vector<4x3xf32>
    %15 = arith.mulf %14, %14 : vector<4x3xf32>
    %cst_9 = arith.constant dense<0.000000e+00> : vector<3xf32>
    %16 = vector.multi_reduction <add>, %15, %cst_9 [0] : vector<4x3xf32> to vector<3xf32>
    %17 = vector.shape_cast %16 : vector<3xf32> to vector<1x3xf32>
    %cst_10 = arith.constant 4.000000e+00 : f32
    %18 = vector.broadcast %cst_10 : f32 to vector<1x3xf32>
    %19 = arith.divf %17, %18 : vector<1x3xf32>
    %cst_11 = arith.constant 9.99999974E-6 : f32
    %20 = vector.broadcast %cst_11 : f32 to vector<1x3xf32>
    %21 = arith.addf %19, %20 : vector<1x3xf32>
    %22 = math.rsqrt %21 : vector<1x3xf32>
    %23 = arith.mulf %4, %22 : vector<1x3xf32>
    %24 = arith.mulf %12, %23 : vector<1x3xf32>
    %25 = arith.subf %5, %24 : vector<1x3xf32>
    %26 = arith.addf %25, %8 : vector<1x3xf32>
    %27 = vector.broadcast %23 : vector<1x3xf32> to vector<4x3xf32>
    %28 = arith.mulf %6, %27 : vector<4x3xf32>
    %29 = vector.broadcast %26 : vector<1x3xf32> to vector<4x3xf32>
    %30 = arith.addf %28, %29 : vector<4x3xf32>
    %c0_12 = arith.constant 0 : index
    %c0_13 = arith.constant 0 : index
    %31 = vector.load %arg3[%c0_12, %c0_13] : memref<4x12xf32, #tpu.memory_space<vmem>>, vector<4x3xf32>
    tpu.vector_store %arg3[%c0_12, %c0_13], %30 {strides = array<i32>} : memref<4x12xf32, #tpu.memory_space<vmem>>, vector<4x3xf32>,
    %c0_14 = arith.constant 0 : index
    %c3 = arith.constant 3 : index
    %32 = vector.load %arg3[%c0_14, %c3] : memref<4x12xf32, #tpu.memory_space<vmem>>, vector<4x3xf32>
    tpu.vector_store %arg3[%c0_14, %c3], %30 {strides = array<i32>} : memref<4x12xf32, #tpu.memory_space<vmem>>, vector<4x3xf32>,
    %c0_15 = arith.constant 0 : index
    %c6 = arith.constant 6 : index
    %33 = vector.load %arg3[%c0_15, %c6] : memref<4x12xf32, #tpu.memory_space<vmem>>, vector<4x3xf32>
    tpu.vector_store %arg3[%c0_15, %c6], %30 {strides = array<i32>} : memref<4x12xf32, #tpu.memory_space<vmem>>, vector<4x3xf32>,
    %c0_16 = arith.constant 0 : index
    %c9 = arith.constant 9 : index
    %34 = vector.load %arg3[%c0_16, %c9] : memref<4x12xf32, #tpu.memory_space<vmem>>, vector<4x3xf32>
    tpu.vector_store %arg3[%c0_16, %c9], %30 {strides = array<i32>} : memref<4x12xf32, #tpu.memory_space<vmem>>, vector<4x3xf32>,
    return
  }
}

</mosaic_0001>

<bundles_post_ra>
// kernel: tpu_custom_call.1
= control target key start
LH: loop header
LB: loop body
LE: loop exit
PB: predicated region body
PF: predicated region fallthrough
CT: control target
= control target key end

     0   :  { %vm24_vm0 = vcmask 1042432   ;;  %v234_v3 = vmov 0.0|0.0   ;;  %vm235_vm1 = vmmov 0   ;;  %v236_v6 = vmov 0.0   ;;  %s301_s0 = inlined_call_operand.vmem [shape: f32[5,27], index: 0, kind: input, shape index: {}]   ;;  %s302_s1 = inlined_call_operand.vmem [shape: f32[27,3], index: 1, kind: input, shape index: {}]   ;;  %s303_s2 = inlined_call_operand.vmem [shape: f32[3,3], index: 2, kind: input, shape index: {}]   ;;  %s304_s3 = inlined_call_operand.hbm [shape: f32[4,12], index: 3, kind: output, shape index: {}]  }
   0x1   :  { %v16_v0 = vld [vmem:[%s302_s1] sm:$0xff]  ;;  %v17_v1 = vld [vmem:[%s302_s1 + $0x8] sm:$0xff]  ;;  %v18_v2 = vld [vmem:[%s302_s1 + $0x10] sm:$0xff]  ;;  %193 = vmatprep.subr.bf16.mxu0 %v234_v3  ;;  %190 = vmatprep.mubr.msk.f32.mxu0 %vm235_vm1, %v236_v6 }
   0x2   :  { %v194_v4 = vpack.c.bf16 %v17_v1, %v16_v0  ;;  %v19_v5 = vld [vmem:[%s302_s1 + $0x18] sm:$0x7] }
   0x3   :  { %8 = vsyncpa [#allocation3], 0  ;;  %v197_v7 = vpack.c.bf16 %v19_v5, %v18_v2  ;;  %vm237_vm2 = vmmov 1   ;;  %v15_v8 = vld [vmem:[%s301_s0] sm:$0x1f]  ;;  %vm20_vm4 = vcmask 220160   ;;  %v134_v30 = vlaneseq }
   0x4   :  { %195 = vmatpush3.bf16.msra.mxu0 %v194_v4  ;;  %vm198_vm3 = vmpackc.low %vm24_vm0, %vm237_vm2  ;;  %vm105_vm5 = vcmask 19456   ;;  %v98_v31 = vld [vmem:[%s303_s2] sm:$0x1]  ;;  %v99_v34 = vld [vmem:[%s303_s2 + $0x1] sm:$0x1]  ;;  %s238_s26 = smov 9  }
   0x5   :  { %196 = vmatprep.subr.bf16.mxu0 %v234_v3  ;;  %v102_v32 = vrot.slane %v98_v31, 4  ;;  %v135_v33 = vshrl.u32 %v134_v30, 7  ;;  %v100_v39 = vld [vmem:[%s303_s2 + $0x2] sm:$0x1]  ;;  %s239_s27 = smov 3   ;;  %s240_s28 = smov 6  }
   0x6   :  { %vm149_vm6 = vcmask 44056   ;;  %s241_s2 = smov [#allocation2]   ;;  %vm154_vm7 = vcmask 68656   ;;  %vm159_vm8 = vcmask 93256  }
   0x7   :  { %v136_v38 = vsub.s32 0, %v135_v33  ;;  %s167_s29 = sshll.u32 %s241_s2, 4  ;;  %s168_s29 = int_to_ptr.vmem [resolvable:$true] %s167_s29 }
   0x8   :  { %199 = vmatpush3.bf16.msk.msra.mxu0 %vm198_vm3, %v197_v7  ;;  %s210_s30 = scalar_lea.vmem %s168_s29, 64  ;;  %p215_p1 = scmp.lt.s32.totalorder %s168_s29, %s168_s29 }
   0x9   :  { %p211_p0 = scmp.ne.s32.totalorder %s168_s29, %s210_s30  ;;  %p216_p2 = scmp.lt.s32.totalorder %s210_s30, %s210_s30 }
   0xb   :  { %191 = vmatmul.mubr.msk.f32.vlgmr.msra.gmra.mrb[0].mxu0 %vm20_vm4, %v15_v8  ;;  %p217_p3 = por %p216_p2, %p215_p1 }
   0xd   :  { %p218_p4 = pnand %p217_p3, %p211_p0 }
  0xde   :  { %v94_v9 = vpop.f32.mrb[0].mxu0 }
  0xdf   :  { %v106_v10 = vsel %vm105_vm5, %v94_v9, 0.0  ;;  %v192_v11 = vpop.f32.mrb[1].mxu0  ;;  %v104_v36 = vadd.f32 %v102_v32, %v94_v9 }
  0xe0   :  { %v107_v12 = vrot.slane %v106_v10, 4 }
  0xe1   :  { %v131_v42 = vrot.slane %v104_v36, 4 }
  0xe2   :  { %v108_v13 = vadd.f32 %v107_v12, %v106_v10 }
  0xe4   :  { %v109_v14 = vrot.slane %v108_v13, 2 }
  0xe6   :  { %v110_v15 = vadd.f32 %v109_v14, %v108_v13 }
  0xe8   :  { %v111_v16 = vrot.slane %v110_v15, 1 }
  0xea   :  { %v112_v17 = vadd.f32 %v111_v16, %v110_v15 }
  0xec   :  { %v114_v18 = vmul.f32 0.25, %v112_v17 }
  0xee   :  { %v115_v19 = vsub.f32 %v94_v9, %v114_v18 }
  0xf0   :  { %v116_v20 = vmul.f32 %v115_v19, %v115_v19 }
  0xf2   :  { %v117_v21 = vsel %vm105_vm5, %v116_v20, 0.0 }
  0xf3   :  { %v118_v22 = vrot.slane %v117_v21, 4 }
  0xf5   :  { %v119_v23 = vadd.f32 %v118_v22, %v117_v21 }
  0xf7   :  { %v120_v24 = vrot.slane %v119_v23, 2 }
  0xf9   :  { %v121_v25 = vadd.f32 %v120_v24, %v119_v23 }
  0xfb   :  { %v122_v26 = vrot.slane %v121_v25, 1 }
  0xfd   :  { %v123_v27 = vadd.f32 %v122_v26, %v121_v25 }
  0xff   :  { %v124_v28 = vmul.f32 0.25, %v123_v27 }
 0x101   :  { %v125_v29 = vadd.f32 1e-05, %v124_v28 }
 0x103   :  { %208 = vrsqrt.f32 %v125_v29 }
 0x10d   :  { %v209_v35 = vpop.eup %208 }
 0x10e   :  { %v127_v37 = vmul.f32 %v209_v35, %v99_v34 }
 0x110   :  { %v128_v40 = vmul.f32 %v127_v37, %v114_v18  ;;  %v137_v43 = vrot.slane %v127_v37, %v136_v38 }
 0x112   :  { %v129_v41 = vsub.f32 %v100_v39, %v128_v40  ;;  %v138_v45 = vmul.f32 %v137_v43, %v94_v9 }
 0x114   :  { %v133_v44 = vadd.f32 %v131_v42, %v129_v41 }
 0x116   :  { %v142_v46 = vrot.slane %v133_v44, %v136_v38 }
 0x118   :  { %v143_v47 = vadd.f32 %v142_v46, %v138_v45 }
 0x11a   :  { %156 = vrot.lane.b32.xlu1 %v143_v47, %s238_s26  ;;  %144 = vst.msk [vmem:[#allocation2] sm:$0xf] %vm105_vm5, %v143_v47  ;;  %146 = vrot.lane.b32.xlu0 %v143_v47, %s239_s27 }
 0x11e   :  { %151 = vrot.lane.b32.xlu0 %v143_v47, %s240_s28 }
 0x18c   :  { %v147_v48 = vpop.permute.xlu0 %146  ;;  %v157_v50 = vpop.permute.xlu1 %156 }
 0x18d   :  { %150 = vst.msk [vmem:[#allocation2] sm:$0xf] %vm149_vm6, %v147_v48 }
 0x190   :  { %v152_v49 = vpop.permute.xlu0 %151 }
 0x191   :  { %155 = vst.msk [vmem:[#allocation2] sm:$0xf] %vm154_vm7, %v152_v49 }
 0x192   :  { %160 = vst.msk [vmem:[#allocation2] sm:$0xf] %vm159_vm8, %v157_v50 }
 0x193   :  { %221 = shalt.err (!%p218_p4)
}
 0x194   :  { %s222_s6 = scalar_lea.hbm %s304_s3, 64 }
 0x195   :  { %p223_p5 = scmp.ne.s32.totalorder %s304_s3, %s222_s6  ;;  %p226_p6 = scmp.lt.u32.totalorder %s222_s6, %s304_s3 }
 0x197   :  { %p228_p7 = pnand %p226_p6, %p223_p5 }
 0x199   :  { %231 = shalt.err (!%p228_p7)
}
 0x19a   :  { %170 = dma.vmem_to_hbm [thread:$0]  %s168_s29, 64, %s304_s3, [#allocation3]  }
 0x19b   :  { %232 = dma.done.wait [#allocation3], 64  }
 0x19c   :  { %233 = vsyncadd [#allocation3], 4294967232 }
 0x19d   :  { %174 = vsyncpa [#allocation3], 1 }

</bundles_post_ra>
